<compile_context>
chip_gen: v6e
topology: v6e:2x2x1
jax: 0.10.0
libtpu: 0.0.40
codegen_flags: <defaults>
</compile_context>

<pallas_src>
import jax
import jax.numpy as jnp
import numpy as np
from jax import lax
from jax.experimental import pallas as pl
from jax.experimental.pallas import tpu as pltpu


def _round_up(x, n):
    return ((x + n - 1) // n) * n


def _make_kernel(s, m, tc, out_dtype):
    s = float(s)
    sm = float(s) * float(m)

    def kernel(feat_ref, w_ref, labels_ref, out_ref):
        # MXU: cosine = f_n @ w_n.T, contracting D on BOTH operands so the
        # weight is consumed in its stored [TC, D] layout (no transpose).
        cosine = lax.dot_general(
            feat_ref[...], w_ref[...],
            dimension_numbers=(((1,), (1,)), ((), ())),
            preferred_element_type=jnp.float32,
        )                                                   # [TB, TC] f32

        # Fused one-hot margin epilogue.  Class axis is grid axis 0.
        labels = labels_ref[...]                            # [TB, 1] int32
        col = lax.broadcasted_iota(jnp.int32, (1, tc), 1) + pl.program_id(0) * tc
        hit = col == labels                                 # [TB, TC] bool
        scaled = cosine * s
        out_ref[...] = jnp.where(hit, scaled - sm, scaled).astype(out_dtype)

    return kernel


def _pick_tc(tc_user, C, D_pad, TB, w_bytes, out_bytes, budget=20 << 20):
    cap = _round_up(C, 128)
    if tc_user is not None:
        return _round_up(min(tc_user, cap), 128)
    for cand in (1024, 512, 256, 128):
        tc = min(cand, cap)
        # double-buffered weight + feature tiles, output tile, f32 cosine temp
        est = 2 * (tc * D_pad * w_bytes + TB * D_pad * w_bytes + TB * tc * out_bytes) \
            + TB * tc * 4
        if est <= budget:
            return tc
    return min(128, cap)


def cosine_margin_product(features, weight, labels, *, s=6.0, m=0.2,
                          tb=None, tc=None, compute_dtype=jnp.bfloat16,
                          out_dtype=jnp.float32):
    """features: [B, D], weight: [C, D], labels: [B] int -> [B, C] out_dtype."""
    B, D = features.shape
    C, D2 = weight.shape
    assert D == D2
    eps = 1e-12  # F.normalize default eps

    # ---- tile sizes -------------------------------------------------------
    if tb is not None:
        TB = _round_up(min(tb, _round_up(B, 8)), 8)
    else:
        TB = min(256, _round_up(B, 8))                      # multiple of 8
    D_pad = _round_up(D, 128)
    c_bytes = jnp.dtype(compute_dtype).itemsize
    o_bytes = jnp.dtype(out_dtype).itemsize
    TC = _pick_tc(tc, C, D_pad, TB, c_bytes, o_bytes)

    B_pad = _round_up(B, TB)
    C_pad = _round_up(C, TC)

    # ---- pre-normalize + cast + (conditionally) pad, all in the wrapper ---
    # Features: normalize along dim=1 (per row): x * rsqrt(max(sumsq, eps^2)).
    f32 = features.astype(jnp.float32)
    inv_fn = lax.rsqrt(jnp.maximum(jnp.sum(f32 * f32, axis=1, keepdims=True),
                                   eps * eps))
    f_n = (f32 * inv_fn).astype(compute_dtype)
    if (B_pad, D_pad) != (B, D):
        f_n = jnp.zeros((B_pad, D_pad), compute_dtype).at[:B, :D].set(f_n)

    # Weight: normalize along the CLASS axis (dim=0), cast, pad (one fused expr).
    w32 = weight.astype(jnp.float32)
    inv_wn = lax.rsqrt(jnp.maximum(jnp.sum(w32 * w32, axis=0, keepdims=True),
                                   eps * eps))
    w_n = (w32 * inv_wn).astype(compute_dtype)
    if (C_pad, D_pad) != (C, D):
        w_n = jnp.zeros((C_pad, D_pad), compute_dtype).at[:C, :D].set(w_n)

    lab = labels.astype(jnp.int32).reshape(B, 1)
    if B_pad != B:
        lab = jnp.full((B_pad, 1), -1, jnp.int32).at[:B, :].set(lab)

    # ---- grid: class axis OUTER, batch axis INNER -> W streams once -------
    grid = (C_pad // TC, B_pad // TB)
    num_c_tiles = grid[0]

    cost = pl.CostEstimate(
        flops=2 * B_pad * C_pad * D_pad,
        transcendentals=0,
        bytes_accessed=int(C_pad * D_pad * c_bytes                 # W once
                           + num_c_tiles * B_pad * D_pad * c_bytes  # f re-read
                           + num_c_tiles * B_pad * 4                # labels
                           + B_pad * C_pad * o_bytes))              # output

    out = pl.pallas_call(
        _make_kernel(s, m, TC, out_dtype),
        out_shape=jax.ShapeDtypeStruct((B_pad, C_pad), out_dtype),
        grid=grid,
        in_specs=[
            pl.BlockSpec((TB, D_pad), lambda c, b: (b, 0)),   # normalized features
            pl.BlockSpec((TC, D_pad), lambda c, b: (c, 0)),   # normalized weight
            pl.BlockSpec((TB, 1), lambda c, b: (b, 0)),       # labels
        ],
        out_specs=pl.BlockSpec((TB, TC), lambda c, b: (b, c)),
        compiler_params=pltpu.CompilerParams(
            dimension_semantics=("parallel", "parallel"),
            vmem_limit_bytes=32 * 1024 * 1024),
        cost_estimate=cost,
    )(f_n, w_n, lab)

    return out[:B, :C]


def _reference(features, weight, labels, s=6.0, m=0.2):
    eps = 1e-12
    f_n = features / jnp.maximum(jnp.linalg.norm(features, axis=1, keepdims=True), eps)
    w_n = weight / jnp.maximum(jnp.linalg.norm(weight, axis=0, keepdims=True), eps)
    cosine = f_n @ w_n.T
    one_hot = jax.nn.one_hot(labels, weight.shape[0], dtype=jnp.float32)
    return s * (cosine - one_hot * m)


if __name__ == "__main__":
    key = jax.random.PRNGKey(0)
    k_feat, k_w, k_lab, k_feat2, k_w2, k_lab2 = jax.random.split(key, 6)
    s, m = 6.0, 0.2

    # --- Test 1: small shapes consistent with the module (single-tile grid) ---
    B, feat_dim, class_num = 8, 128, 21
    weight = 0.01 * jax.random.normal(k_w, (class_num, feat_dim), dtype=jnp.float32)
    features = jax.random.normal(k_feat, (B, feat_dim), dtype=jnp.float32)
    labels = jax.random.randint(k_lab, (B,), 0, class_num, dtype=jnp.int32)
    ref = _reference(features, weight, labels, s=s, m=m)

    # f32 MXU operands: tight tolerance vs reference.
    out_f32 = cosine_margin_product(features, weight, labels, s=s, m=m,
                                    compute_dtype=jnp.float32)
    out_f32 = jax.block_until_ready(out_f32)
    assert out_f32.shape == (B, class_num)
    assert np.allclose(np.asarray(out_f32), np.asarray(ref), atol=1e-4, rtol=1e-5)

    # bf16 MXU operands with f32 accumulation: loose tolerance vs f32 reference.
    out_bf16 = cosine_margin_product(features, weight, labels, s=s, m=m,
                                     compute_dtype=jnp.bfloat16)
    out_bf16 = jax.block_until_ready(out_bf16)
    assert np.allclose(np.asarray(out_bf16), np.asarray(ref), atol=3e-1, rtol=5e-2)

    # bf16 output store path.
    out_bf16o = cosine_margin_product(features, weight, labels, s=s, m=m,
                                      compute_dtype=jnp.bfloat16,
                                      out_dtype=jnp.bfloat16)
    out_bf16o = jax.block_until_ready(out_bf16o)
    assert out_bf16o.dtype == jnp.bfloat16
    assert np.allclose(np.asarray(out_bf16o, dtype=np.float32), np.asarray(ref),
                       atol=3e-1, rtol=5e-2)

    # --- Test 2: multi-tile grid (B, C and D all padded) ---
    B2, feat_dim2, class_num2 = 20, 96, 200
    weight2 = 0.01 * jax.random.normal(k_w2, (class_num2, feat_dim2), dtype=jnp.float32)
    features2 = jax.random.normal(k_feat2, (B2, feat_dim2), dtype=jnp.float32)
    labels2 = jax.random.randint(k_lab2, (B2,), 0, class_num2, dtype=jnp.int32)
    ref2 = _reference(features2, weight2, labels2, s=s, m=m)

    out2 = cosine_margin_product(features2, weight2, labels2, s=s, m=m,
                                 tb=8, tc=128, compute_dtype=jnp.float32)
    out2 = jax.block_until_ready(out2)
    assert out2.shape == (B2, class_num2)
    assert np.allclose(np.asarray(out2), np.asarray(ref2), atol=1e-4, rtol=1e-5)

    print("KERNEL_OK")
</pallas_src>

<mosaic_0001>
module attributes {stable_mosaic.version = 11 : i64} {
  func.func @kernel(%arg0: i32, %arg1: i32, %arg2: memref<8x128xf32, #tpu.memory_space<vmem>>, %arg3: memref<128x128xf32, #tpu.memory_space<vmem>>, %arg4: memref<8x1xi32, #tpu.memory_space<vmem>>, %arg5: memref<8x128xf32, #tpu.memory_space<vmem>>) attributes {dimension_semantics = [#tpu.dimension_semantics<parallel>, #tpu.dimension_semantics<parallel>], iteration_bounds = array<i64: 1, 1>, scalar_prefetch = 0 : i64, scratch_operands = 0 : i64, tpu.core_type = #tpu.core_type<tc>, window_params = [{transform_indices = @transform_0, window_bounds = array<i64: 8, 128>}, {transform_indices = @transform_1, window_bounds = array<i64: 128, 128>}, {transform_indices = @transform_2, window_bounds = array<i64: 8, 1>}, {transform_indices = @transform_3, window_bounds = array<i64: 8, 128>}]} {
    %c0 = arith.constant 0 : index
    %c0_0 = arith.constant 0 : index
    %0 = vector.load %arg2[%c0, %c0_0] : memref<8x128xf32, #tpu.memory_space<vmem>>, vector<8x128xf32>
    %c0_1 = arith.constant 0 : index
    %c0_2 = arith.constant 0 : index
    %1 = vector.load %arg3[%c0_1, %c0_2] : memref<128x128xf32, #tpu.memory_space<vmem>>, vector<128x128xf32>
    %cst = arith.constant dense<0.000000e+00> : vector<8x128xf32>
    %2 = tpu.matmul %0, %1, %cst {dimension_numbers = #tpu.dot_dimension_numbers<[1], [1], [0], [0], [0, 0, 1, 0], [], []>} : vector<8x128xf32>, vector<128x128xf32>, vector<8x128xf32> -> vector<8x128xf32>
    %c0_3 = arith.constant 0 : index
    %c0_4 = arith.constant 0 : index
    %3 = vector.load %arg4[%c0_3, %c0_4] : memref<8x1xi32, #tpu.memory_space<vmem>>, vector<8x1xi32>
    %4 = tpu.iota {dimensions = array<i32: 1>} : vector<1x128xi32>
    %c128_i32 = arith.constant 128 : i32
    %5 = arith.muli %arg0, %c128_i32 : i32
    %6 = vector.broadcast %5 : i32 to vector<1x128xi32>
    %7 = arith.addi %4, %6 : vector<1x128xi32>
    %8 = vector.broadcast %7 : vector<1x128xi32> to vector<8x128xi32>
    %9 = vector.broadcast %3 : vector<8x1xi32> to vector<8x128xi32>
    %10 = arith.cmpi eq, %8, %9 : vector<8x128xi32>
    %cst_5 = arith.constant 6.000000e+00 : f32
    %11 = vector.broadcast %cst_5 : f32 to vector<8x128xf32>
    %12 = arith.mulf %2, %11 : vector<8x128xf32>
    %cst_6 = arith.constant 1.200000e+00 : f32
    %13 = vector.broadcast %cst_6 : f32 to vector<8x128xf32>
    %14 = arith.subf %12, %13 : vector<8x128xf32>
    %15 = arith.select %10, %14, %12 : vector<8x128xi1>, vector<8x128xf32>
    %c0_7 = arith.constant 0 : index
    %c0_8 = arith.constant 0 : index
    %16 = vector.load %arg5[%c0_7, %c0_8] : memref<8x128xf32, #tpu.memory_space<vmem>>, vector<8x128xf32>
    tpu.vector_store %arg5[%c0_7, %c0_8], %15 {strides = array<i32>} : memref<8x128xf32, #tpu.memory_space<vmem>>, vector<8x128xf32>,
    return
  }
  func.func @transform_0(%arg0: i32, %arg1: i32) -> (i32, i32) {
    %c0_i32 = arith.constant 0 : i32
    %c0_i32_0 = arith.constant 0 : i32
    return %arg1, %c0_i32 : i32, i32
  }
  func.func @transform_1(%arg0: i32, %arg1: i32) -> (i32, i32) {
    %c0_i32 = arith.constant 0 : i32
    %c0_i32_0 = arith.constant 0 : i32
    return %arg0, %c0_i32 : i32, i32
  }
  func.func @transform_2(%arg0: i32, %arg1: i32) -> (i32, i32) {
    %c0_i32 = arith.constant 0 : i32
    %c0_i32_0 = arith.constant 0 : i32
    return %arg1, %c0_i32 : i32, i32
  }
  func.func @transform_3(%arg0: i32, %arg1: i32) -> (i32, i32) {
    %c0_i32 = arith.constant 0 : i32
    return %arg1, %arg0 : i32, i32
  }
}

</mosaic_0001>

<bundles_post_ra>
// kernel: tpu_custom_call.1
= control target key start
LH: loop header
LB: loop body
LE: loop exit
PB: predicated region body
PF: predicated region fallthrough
CT: control target
= control target key end

     0   :  { %8 = vsyncpa [#allocation3], 0  ;;  %s289_s0 = inlined_call_operand.vmem [shape: f32[8,128], index: 0, kind: input, shape index: {}]   ;;  %s290_s1 = inlined_call_operand.hbm [shape: f32[128,128], index: 1, kind: input, shape index: {}]   ;;  %s291_s2 = inlined_call_operand.vmem [shape: s32[8,1], index: 2, kind: input, shape index: {}]   ;;  %s292_s3 = inlined_call_operand.hbm [shape: f32[8,128], index: 3, kind: output, shape index: {}]  }
   0x1   :  { %9 = vsyncpa [#allocation4], 0  ;;  %s250_s12 = smov [#allocation2]  }
   0x2   :  { %s17_s13 = sshll.u32 %s250_s12, 4  ;;  %s18_s13 = int_to_ptr.vmem [resolvable:$true] %s17_s13 }
   0x3   :  { %s214_s14 = scalar_lea.vmem %s18_s13, 2048  ;;  %p219_p1 = scmp.lt.s32.totalorder %s18_s13, %s18_s13 }
   0x4   :  { %p215_p0 = scmp.ne.s32.totalorder %s18_s13, %s214_s14  ;;  %p220_p2 = scmp.lt.s32.totalorder %s214_s14, %s214_s14 }
   0x6   :  { %p221_p3 = por %p220_p2, %p219_p1 }
   0x8   :  { %p222_p4 = pnand %p221_p3, %p215_p0 }
   0xa   :  { %225 = shalt.err (!%p222_p4)
}
   0xb   :  { %s251_s15 = smov 128   ;;  %s252_s16 = smov 8  }
   0xc   :  { %23 = dma.hbm_to_vmem [thread:$0]  %s290_s1, 2048, %s18_s13, [#allocation3], %s251_s15, %s251_s15, %s252_s16  }
   0xd   :  { %246 = dma.done.wait [#allocation3], 2048  }
   0xe   :  { %247 = vsyncadd [#allocation3], 4294965248  ;;  %v253_v0 = vmov 0.0   ;;  %vm254_vm0 = vmmov 0   ;;  %v255_v1 = vmov 0   ;;  %v45_v2 = vld [vmem:[#allocation2 + $0x78] sm:$0xff]  ;;  %v117_v20 = vlaneseq }
   0xf   :  { %163 = vmatprep.subr.mxu0 %v253_v0  ;;  %195 = vmatprep.mubr.msk.f32.mxu0 %vm254_vm0, %v253_v0  ;;  %v44_v3 = vld [vmem:[#allocation2 + $0x70] sm:$0xff]  ;;  %v116_v4 = vld [vmem:[%s291_s2] sm:$0xff]  ;;  %v43_v5 = vld [vmem:[#allocation2 + $0x68] sm:$0xff]  ;;  %s256_s21 = smov [#allocation5]  }
  0x10   :  { %205 = vset.pattern.permute.xlu0 %v255_v1  ;;  %164 = vmatpush3.xpose.msra.mxu0 %v45_v2  ;;  %v42_v6 = vld [vmem:[#allocation2 + $0x60] sm:$0xff]  ;;  %v41_v7 = vld [vmem:[#allocation2 + $0x58] sm:$0xff]  ;;  %v40_v8 = vld [vmem:[#allocation2 + $0x50] sm:$0xff]  ;;  %v118_v21 = vand.u32 127, %v117_v20  ;;  %s136_s22 = sshll.u32 %s256_s21, 4  ;;  %s137_s22 = int_to_ptr.vmem [resolvable:$true] %s136_s22 }
  0x11   :  { %165 = vmatprep.subr.mxu0 %v253_v0  ;;  %123 = vperm.xlu0 %205, %v116_v4   ;;  %v39_v9 = vld [vmem:[#allocation2 + $0x48] sm:$0xff]  ;;  %v38_v10 = vld [vmem:[#allocation2 + $0x40] sm:$0xff]  ;;  %v37_v11 = vld [vmem:[#allocation2 + $0x38] sm:$0xff]  ;;  %s226_s23 = scalar_lea.vmem %s137_s22, 128  ;;  %p231_p6 = scmp.lt.s32.totalorder %s137_s22, %s137_s22 }
  0x12   :  { %v36_v12 = vld [vmem:[#allocation2 + $0x30] sm:$0xff]  ;;  %v35_v13 = vld [vmem:[#allocation2 + $0x28] sm:$0xff]  ;;  %v34_v14 = vld [vmem:[#allocation2 + $0x20] sm:$0xff]  ;;  %p227_p5 = scmp.ne.s32.totalorder %s137_s22, %s226_s23  ;;  %p232_p7 = scmp.lt.s32.totalorder %s226_s23, %s226_s23 }
  0x13   :  { %v33_v15 = vld [vmem:[#allocation2 + $0x18] sm:$0xff]  ;;  %v32_v16 = vld [vmem:[#allocation2 + $0x10] sm:$0xff]  ;;  %v31_v17 = vld [vmem:[#allocation2 + $0x8] sm:$0xff] }
  0x14   :  { %166 = vmatpush3.xpose.msra.mxu0 %v44_v3  ;;  %v30_v18 = vld [vmem:[#allocation2] sm:$0xff]  ;;  %p233_p8 = por %p232_p7, %p231_p6 }
  0x15   :  { %167 = vmatprep.subr.mxu0 %v253_v0  ;;  %v29_v19 = vld [vmem:[%s289_s0] sm:$0xff] }
  0x16   :  { %p234_p9 = pnand %p233_p8, %p227_p5 }
  0x18   :  { %168 = vmatpush3.xpose.msra.mxu0 %v43_v5 }
  0x19   :  { %169 = vmatprep.subr.mxu0 %v253_v0 }
  0x1c   :  { %170 = vmatpush3.xpose.msra.mxu0 %v42_v6 }
  0x1d   :  { %171 = vmatprep.subr.mxu0 %v253_v0 }
  0x20   :  { %172 = vmatpush3.xpose.msra.mxu0 %v41_v7 }
  0x21   :  { %173 = vmatprep.subr.mxu0 %v253_v0 }
  0x24   :  { %174 = vmatpush3.xpose.msra.mxu0 %v40_v8 }
  0x25   :  { %175 = vmatprep.subr.mxu0 %v253_v0 }
  0x28   :  { %176 = vmatpush3.xpose.msra.mxu0 %v39_v9 }
  0x29   :  { %177 = vmatprep.subr.mxu0 %v253_v0 }
  0x2c   :  { %178 = vmatpush3.xpose.msra.mxu0 %v38_v10 }
  0x2d   :  { %179 = vmatprep.subr.mxu0 %v253_v0 }
  0x30   :  { %180 = vmatpush3.xpose.msra.mxu0 %v37_v11 }
  0x31   :  { %181 = vmatprep.subr.mxu0 %v253_v0 }
  0x34   :  { %182 = vmatpush3.xpose.msra.mxu0 %v36_v12 }
  0x35   :  { %183 = vmatprep.subr.mxu0 %v253_v0 }
  0x38   :  { %184 = vmatpush3.xpose.msra.mxu0 %v35_v13 }
  0x39   :  { %185 = vmatprep.subr.mxu0 %v253_v0 }
  0x3c   :  { %186 = vmatpush3.xpose.msra.mxu0 %v34_v14 }
  0x3d   :  { %187 = vmatprep.subr.mxu0 %v253_v0 }
  0x40   :  { %188 = vmatpush3.xpose.msra.mxu0 %v33_v15 }
  0x41   :  { %189 = vmatprep.subr.mxu0 %v253_v0 }
  0x44   :  { %190 = vmatpush3.xpose.msra.mxu0 %v32_v16 }
  0x45   :  { %191 = vmatprep.subr.mxu0 %v253_v0 }
  0x48   :  { %192 = vmatpush3.xpose.msra.mxu0 %v31_v17 }
  0x49   :  { %193 = vmatprep.subr.mxu0 %v253_v0 }
  0x4c   :  { %194 = vmatpush3.xpose.msra.mxu0 %v30_v18 }
  0x4f   :  { %196 = vmatmul.mubr.f32.vlgmr.msra.gmra.mxu0 %v29_v19 }
  0x8c   :  { %v124_v22 = vpop.permute.xlu0 %123 }
  0x8d   :  { %vm125_vm1 = vcmp.eq.s32.totalorder %v118_v21, %v124_v22 }
 0x10f   :  { %v112_v23 = vpop.f32.mrf.mxu0 }
 0x110   :  { %v126_v24 = vmul.f32 6.0, %v112_v23 }
 0x111   :  { %v197_v25 = vpop.f32.mrf.mxu0 }
 0x112   :  { %v145_v26 = vadd.f32 -1.2, %v126_v24 }
 0x114   :  { %v128_v27 = vsel %vm125_vm1, %v145_v26, %v126_v24 }
 0x115   :  { %129 = vst [vmem:[#allocation5] sm:$0xff] %v128_v27 }
 0x116   :  { %237 = shalt.err (!%p234_p9)
}
 0x117   :  { %139 = dma.vmem_to_hbm [thread:$0]  %s137_s22, 128, %s292_s3, [#allocation4]  }
 0x118   :  { %248 = dma.done.wait [#allocation4], 128  }
 0x119   :  { %249 = vsyncadd [#allocation4], 4294967168 }
 0x11a   :  { %143 = vsyncpa [#allocation3], 1 }
 0x11b   :  { %144 = vsyncpa [#allocation4], 1 }

</bundles_post_ra>
